<compile_context>
chip_gen: v6e
topology: v6e:2x2x1
jax: 0.10.0
libtpu: 0.0.40
codegen_flags: <defaults>
</compile_context>

<pallas_src>
import functools

import jax
import jax.numpy as jnp
import numpy as np
from jax import lax
from jax.experimental import pallas as pl
from jax.experimental.pallas import tpu as pltpu


def _round_up(n, m):
    return ((n + m - 1) // m) * m


# ----------------------------------------------------------------------------
# The single fused kernel: all branches, conv + accumulate + upsample.
# ----------------------------------------------------------------------------
def _fusion_kernel(*refs, branch_meta):
    """Everything in lane-dense 2-D (B*H, W*C) layout; acc never leaves VMEM.

    Per branch i the refs are (in order):
      x_i    : (B*H_i, W_i*Cin_i)        bf16  flattened NHWC input
      mcat_i : (W_i*Cin_i, 3*Npad_i)     bf16  3 banded conv matrices, concat on N
      r0_i   : (Mout_i, B*H_i)           bf16  row matrix for ky=0 (shift-down,
                                               fused with ah when upsampling)
      r2_i   : (Mout_i, B*H_i)           bf16  row matrix for ky=2 (shift-up)
      [r1_i  : (Mout_i, B*H_i)           bf16  ah (only if upsampling)]
      [awc_i : (Npad_i, NpadOut_i)       bf16  column interp (only if upsampling)]
    Last ref is the output (B*H_out, NpadOut) f32.
    """
    out_ref = refs[-1]
    idx = 0
    acc = None
    for n_pad, upsample in branch_meta:
        x_ref, m_ref, r0_ref, r2_ref = refs[idx], refs[idx + 1], refs[idx + 2], refs[idx + 3]
        idx += 4
        if upsample:
            r1_ref, awc_ref = refs[idx], refs[idx + 1]
            idx += 2

        # One bf16 MXU dot covers all 3 kernel rows (K = W*Cin, N = 3*Npad).
        y = jnp.dot(x_ref[...], m_ref[...], preferred_element_type=jnp.float32)
        # Npad is a multiple of 128 -> these slices are vreg-aligned.
        y0 = y[:, 0 * n_pad:1 * n_pad]
        y1 = y[:, 1 * n_pad:2 * n_pad]
        y2 = y[:, 2 * n_pad:3 * n_pad]

        # output += this branch's center-row contribution (acc stays f32).
        t = y1 if acc is None else acc + y1

        r0 = r0_ref[...].astype(jnp.float32)
        r2 = r2_ref[...].astype(jnp.float32)
        if upsample:
            # Vertical shifts are folded into the row-interp matrices on the
            # host:  up(acc + conv) = (ah@Sdn)y0 + ah(acc + y1) + (ah@Sup)y2,
            # followed by the column interp awc (all block-diag over batch).
            r1 = r1_ref[...].astype(jnp.float32)
            s = (jnp.dot(r0, y0, preferred_element_type=jnp.float32)
                 + jnp.dot(r1, t, preferred_element_type=jnp.float32)
                 + jnp.dot(r2, y2, preferred_element_type=jnp.float32))
            acc = jnp.dot(s, awc_ref[...].astype(jnp.float32),
                          preferred_element_type=jnp.float32)
        else:
            # No upsample: r0/r2 are pure (host-precomputed) shift matrices.
            acc = (t
                   + jnp.dot(r0, y0, preferred_element_type=jnp.float32)
                   + jnp.dot(r2, y2, preferred_element_type=jnp.float32))

    out_ref[...] = acc.astype(out_ref.dtype)


# ----------------------------------------------------------------------------
# Host-side (numpy) precomputation — done ONCE per module instance.
# ----------------------------------------------------------------------------
def _band_weight_matrix_cat(w_oihw, W, n_pad):
    """(Cout,Cin,3,3) weights -> (W*Cin, 3*n_pad) banded matmul matrix.

    Columns [ky*n_pad, ky*n_pad + W*Cout) hold kernel row ky; the horizontal
    zero padding is folded in (out-of-range taps dropped); each ky block is
    zero-padded to n_pad (multiple of 128) lanes.
    """
    Cout, Cin, KH, KW = w_oihw.shape
    assert KH == 3 and KW == 3
    ind = np.zeros((KW, W, W), np.float32)                 # [kx, w_in, w_out]
    for kx in range(KW):
        for w_out in range(W):
            w_in = w_out + kx - 1
            if 0 <= w_in < W:
                ind[kx, w_in, w_out] = 1.0
    # m[ky, w_in, ci, w_out, co] = sum_kx ind[kx,w_in,w_out] * w[co,ci,ky,kx]
    m = np.einsum("dnm,oiyd->ynimo", ind, w_oihw.astype(np.float32))
    m = m.reshape(KH, W * Cin, W * Cout)
    if n_pad > W * Cout:
        m = np.pad(m, ((0, 0), (0, 0), (0, n_pad - W * Cout)))
    return np.concatenate([m[0], m[1], m[2]], axis=1)      # (W*Cin, 3*n_pad)


def _interp_matrix(n_out, n_in):
    """Dense (n_out, n_in) bilinear matrix, PyTorch align_corners=True rule."""
    if n_out == 1 or n_in == 1:
        A = np.zeros((n_out, n_in), np.float32)
        A[:, 0] = 1.0
        return A
    src = np.arange(n_out, dtype=np.float64) * (n_in - 1) / (n_out - 1)
    lo = np.clip(np.floor(src).astype(np.int64), 0, n_in - 1)
    hi = np.minimum(lo + 1, n_in - 1)
    frac = (src - lo).astype(np.float32)
    A = np.zeros((n_out, n_in), np.float32)
    rows = np.arange(n_out)
    np.add.at(A, (rows, lo), 1.0 - frac)
    np.add.at(A, (rows, hi), frac)
    return A


def build_fusion_plan(weights_oihw, scale_factors, input_hw, batch):
    """Precompute all static matrices (numpy) and stage them as bf16 constants.

    weights_oihw  : list of (Cout, Cin, 3, 3) conv weights (PyTorch layout)
    scale_factors : list of ints (max_size // size_i)
    input_hw      : list of (H_i, W_i) spatial sizes
    batch         : batch size B (folded into the matmul M dim; at production
                    scale B would be a grid axis instead of kron(I_B, .)).
    """
    out_feats = int(np.asarray(weights_oihw[0]).shape[0])
    eye_b = np.eye(batch, dtype=np.float32)
    branches = []
    acc_hw = None
    for w, sf, (H, W) in zip(weights_oihw, scale_factors, input_hw):
        w_np = np.asarray(w, dtype=np.float32)
        cout, cin = int(w_np.shape[0]), int(w_np.shape[1])
        assert cout == out_feats
        if acc_hw is not None and acc_hw != (H, W):
            raise ValueError(
                f"running output spatial size {acc_hw} must match branch conv "
                f"output size {(H, W)} (same constraint as the PyTorch module)")

        n_pad = _round_up(W * cout, 128)
        mcat = _band_weight_matrix_cat(w_np, W, n_pad)
        s_dn = np.eye(H, k=-1, dtype=np.float32)   # (S_dn @ y)[r] = y[r-1]
        s_up = np.eye(H, k=1, dtype=np.float32)    # (S_up @ y)[r] = y[r+1]

        if sf != 1:
            ah = _interp_matrix(H * sf, H)                     # (Ho, H)
            aw = _interp_matrix(W * sf, W)                     # (Wo, W)
            r0 = np.kron(eye_b, ah @ s_dn)                     # (B*Ho, B*H)
            r1 = np.kron(eye_b, ah)
            r2 = np.kron(eye_b, ah @ s_up)
            # Column interp lifted onto the flattened (W*Cout) lane axis,
            # zero-padded to the 128-lane-aligned widths.
            awc = np.kron(aw.T, np.eye(cout, dtype=np.float32))   # (W*C, Wo*C)
            n_out_pad = _round_up(W * sf * cout, 128)
            awc_pad = np.zeros((n_pad, n_out_pad), np.float32)
            awc_pad[:W * cout, :W * sf * cout] = awc
            consts = (mcat, r0, r2, r1, awc_pad)
            acc_hw = (H * sf, W * sf)
        else:
            r0 = np.kron(eye_b, s_dn)                          # (B*H, B*H)
            r2 = np.kron(eye_b, s_up)
            consts = (mcat, r0, r2)
            acc_hw = (H, W)

        branches.append(dict(
            upsample=(sf != 1),
            hw=(H, W),
            cin=cin,
            n_pad=n_pad,
            consts=tuple(jnp.asarray(c, dtype=jnp.bfloat16) for c in consts),
        ))
    return dict(batch=batch, out_feats=out_feats, out_hw=acc_hw,
                branches=branches)


# ----------------------------------------------------------------------------
# Public forward pass (NCHW in / NCHW out, like the PyTorch module)
# ----------------------------------------------------------------------------
def multi_resolution_fusion(xs_nchw, plan):
    B = plan["batch"]
    cout = plan["out_feats"]
    Ho, Wo = plan["out_hw"]

    operands, branch_meta = [], []
    for x, br in zip(xs_nchw, plan["branches"]):
        b, cin, H, W = x.shape
        assert b == B and cin == br["cin"] and (H, W) == br["hw"]
        # NCHW -> lane-dense flattened (B*H, W*Cin), bf16 for the MXU.
        x_flat = (jnp.transpose(x, (0, 2, 3, 1))
                  .reshape(B * H, W * cin)
                  .astype(jnp.bfloat16))
        operands.append(x_flat)
        operands.extend(br["consts"])
        branch_meta.append((br["n_pad"], br["upsample"]))

    in_specs = [pl.BlockSpec(op.shape, lambda i: (0, 0)) for op in operands]

    M_out = B * Ho
    N_valid = Wo * cout
    N_pad = _round_up(N_valid, 128)          # lane-dense HBM store

    kernel = functools.partial(_fusion_kernel, branch_meta=tuple(branch_meta))
    out_flat = pl.pallas_call(
        kernel,
        out_shape=jax.ShapeDtypeStruct((M_out, N_pad), jnp.float32),
        grid=(1,),
        in_specs=in_specs,
        out_specs=pl.BlockSpec((M_out, N_pad), lambda i: (0, 0)),
        compiler_params=pltpu.CompilerParams(
            dimension_semantics=("arbitrary",),
            vmem_limit_bytes=32 * 1024 * 1024),
    )(*operands)

    out = out_flat[:, :N_valid].reshape(B, Ho, Wo, cout)
    return jnp.transpose(out, (0, 3, 1, 2))


# ----------------------------------------------------------------------------
# Pure-JAX f32 (HIGHEST precision) reference — correctness check only.
# ----------------------------------------------------------------------------
def _reference(xs_nchw, weights_oihw, scale_factors):
    output = None
    for x, w, sf in zip(xs_nchw, weights_oihw, scale_factors):
        y = lax.conv_general_dilated(
            x.astype(jnp.float32), w.astype(jnp.float32),
            window_strides=(1, 1), padding="SAME",
            dimension_numbers=("NCHW", "OIHW", "NCHW"),
            precision=lax.Precision.HIGHEST)
        output = y if output is None else output + y
        if sf != 1:
            B, C, H, W = output.shape
            ah = jnp.asarray(_interp_matrix(H * sf, H))
            aw = jnp.asarray(_interp_matrix(W * sf, W))
            output = jnp.einsum("oh,bchw,pw->bcop", ah, output, aw,
                                precision=lax.Precision.HIGHEST)
    return output


# ----------------------------------------------------------------------------
# Demo
# ----------------------------------------------------------------------------
if __name__ == "__main__":
    key = jax.random.PRNGKey(0)

    # Module config: out_feats=8, shapes=[(4, 8), (4, 16)]
    #   -> scale_factors = [16//8, 16//16] = [2, 1]
    out_feats = 8
    shapes = [(4, 8), (4, 16)]
    _, max_size = max(shapes, key=lambda s: s[1])
    scale_factors = [max_size // s for _, s in shapes]

    batch = 2
    k_x0, k_x1, k_w0, k_w1 = jax.random.split(key, 4)
    x0 = jax.random.normal(k_x0, (batch, shapes[0][0], shapes[0][1], shapes[0][1]),
                           jnp.float32)
    x1 = jax.random.normal(k_x1, (batch, shapes[1][0], shapes[1][1], shapes[1][1]),
                           jnp.float32)
    # Deterministic Conv2d weights (Cout, Cin, 3, 3), bias=False.
    w0 = 0.1 * jax.random.normal(k_w0, (out_feats, shapes[0][0], 3, 3), jnp.float32)
    w1 = 0.1 * jax.random.normal(k_w1, (out_feats, shapes[1][0], 3, 3), jnp.float32)

    xs = [x0, x1]
    ws = [w0, w1]
    input_hw = [(shapes[0][1], shapes[0][1]), (shapes[1][1], shapes[1][1])]

    # Built once per "module"; forward calls reuse it.
    plan = build_fusion_plan(ws, scale_factors, input_hw, batch)

    out = multi_resolution_fusion(xs, plan)
    out = jax.block_until_ready(out)
    assert out.shape == (batch, out_feats, max_size, max_size), out.shape

    ref = _reference(xs, ws, scale_factors)
    # Error bound: bf16-rounded conv operands with f32 accumulation give a
    # per-output error around 9*Cin*E|x*w|*2^-8 ~ 5e-3 here (plus a smaller
    # bf16-interp-coefficient term); 2e-2 atol/rtol leaves >4x margin while
    # still catching any real kernel bug (which would be O(1)).
    np.testing.assert_allclose(np.asarray(out), np.asarray(ref),
                               atol=2e-2, rtol=2e-2)

    print("KERNEL_OK")
</pallas_src>

<mosaic_0001>
module attributes {stable_mosaic.version = 11 : i64} {
  func.func @_fusion_kernel(%arg0: i32, %arg1: memref<16x32xbf16, #tpu.memory_space<vmem>>, %arg2: memref<32x384xbf16, #tpu.memory_space<vmem>>, %arg3: memref<32x16xbf16, #tpu.memory_space<vmem>>, %arg4: memref<32x16xbf16, #tpu.memory_space<vmem>>, %arg5: memref<32x16xbf16, #tpu.memory_space<vmem>>, %arg6: memref<128x128xbf16, #tpu.memory_space<vmem>>, %arg7: memref<32x64xbf16, #tpu.memory_space<vmem>>, %arg8: memref<64x384xbf16, #tpu.memory_space<vmem>>, %arg9: memref<32x32xbf16, #tpu.memory_space<vmem>>, %arg10: memref<32x32xbf16, #tpu.memory_space<vmem>>, %arg11: memref<32x128xf32, #tpu.memory_space<vmem>>) attributes {dimension_semantics = [#tpu.dimension_semantics<arbitrary>], iteration_bounds = array<i64: 1>, scalar_prefetch = 0 : i64, scratch_operands = 0 : i64, tpu.core_type = #tpu.core_type<tc>, window_params = [{pipeline_mode = #tpu.pipeline_mode<synchronous>, transform_indices = @transform_0, window_bounds = array<i64: 16, 32>}, {pipeline_mode = #tpu.pipeline_mode<synchronous>, transform_indices = @transform_1, window_bounds = array<i64: 32, 384>}, {pipeline_mode = #tpu.pipeline_mode<synchronous>, transform_indices = @transform_2, window_bounds = array<i64: 32, 16>}, {pipeline_mode = #tpu.pipeline_mode<synchronous>, transform_indices = @transform_3, window_bounds = array<i64: 32, 16>}, {pipeline_mode = #tpu.pipeline_mode<synchronous>, transform_indices = @transform_4, window_bounds = array<i64: 32, 16>}, {pipeline_mode = #tpu.pipeline_mode<synchronous>, transform_indices = @transform_5, window_bounds = array<i64: 128, 128>}, {pipeline_mode = #tpu.pipeline_mode<synchronous>, transform_indices = @transform_6, window_bounds = array<i64: 32, 64>}, {pipeline_mode = #tpu.pipeline_mode<synchronous>, transform_indices = @transform_7, window_bounds = array<i64: 64, 384>}, {pipeline_mode = #tpu.pipeline_mode<synchronous>, transform_indices = @transform_8, window_bounds = array<i64: 32, 32>}, {pipeline_mode = #tpu.pipeline_mode<synchronous>, transform_indices = @transform_9, window_bounds = array<i64: 32, 32>}, {pipeline_mode = #tpu.pipeline_mode<synchronous>, transform_indices = @transform_10, window_bounds = array<i64: 32, 128>}]} {
    %c0 = arith.constant 0 : index
    %c0_0 = arith.constant 0 : index
    %0 = vector.load %arg1[%c0, %c0_0] : memref<16x32xbf16, #tpu.memory_space<vmem>>, vector<16x32xbf16>
    %c0_1 = arith.constant 0 : index
    %c0_2 = arith.constant 0 : index
    %1 = vector.load %arg2[%c0_1, %c0_2] : memref<32x384xbf16, #tpu.memory_space<vmem>>, vector<32x384xbf16>
    %cst = arith.constant dense<0.000000e+00> : vector<16x384xf32>
    %2 = tpu.matmul %0, %1, %cst {dimension_numbers = #tpu.dot_dimension_numbers<[1], [0], [0], [1], [0, 0, 1, 1], [], []>} : vector<16x32xbf16>, vector<32x384xbf16>, vector<16x384xf32> -> vector<16x384xf32>
    %3 = vector.extract_strided_slice %2 {offsets = [0, 0], sizes = [16, 128], strides = [1, 1]} : vector<16x384xf32> to vector<16x128xf32>
    %4 = vector.extract_strided_slice %2 {offsets = [0, 128], sizes = [16, 128], strides = [1, 1]} : vector<16x384xf32> to vector<16x128xf32>
    %5 = vector.extract_strided_slice %2 {offsets = [0, 256], sizes = [16, 128], strides = [1, 1]} : vector<16x384xf32> to vector<16x128xf32>
    %c0_3 = arith.constant 0 : index
    %c0_4 = arith.constant 0 : index
    %6 = vector.load %arg3[%c0_3, %c0_4] : memref<32x16xbf16, #tpu.memory_space<vmem>>, vector<32x16xbf16>
    %7 = arith.extf %6 : vector<32x16xbf16> to vector<32x16xf32>
    %c0_5 = arith.constant 0 : index
    %c0_6 = arith.constant 0 : index
    %8 = vector.load %arg4[%c0_5, %c0_6] : memref<32x16xbf16, #tpu.memory_space<vmem>>, vector<32x16xbf16>
    %9 = arith.extf %8 : vector<32x16xbf16> to vector<32x16xf32>
    %c0_7 = arith.constant 0 : index
    %c0_8 = arith.constant 0 : index
    %10 = vector.load %arg5[%c0_7, %c0_8] : memref<32x16xbf16, #tpu.memory_space<vmem>>, vector<32x16xbf16>
    %11 = arith.extf %10 : vector<32x16xbf16> to vector<32x16xf32>
    %cst_9 = arith.constant dense<0.000000e+00> : vector<32x128xf32>
    %12 = tpu.matmul %7, %3, %cst_9 {dimension_numbers = #tpu.dot_dimension_numbers<[1], [0], [0], [1], [0, 0, 1, 1], [], []>} : vector<32x16xf32>, vector<16x128xf32>, vector<32x128xf32> -> vector<32x128xf32>
    %cst_10 = arith.constant dense<0.000000e+00> : vector<32x128xf32>
    %13 = tpu.matmul %11, %4, %cst_10 {dimension_numbers = #tpu.dot_dimension_numbers<[1], [0], [0], [1], [0, 0, 1, 1], [], []>} : vector<32x16xf32>, vector<16x128xf32>, vector<32x128xf32> -> vector<32x128xf32>
    %14 = arith.addf %12, %13 : vector<32x128xf32>
    %cst_11 = arith.constant dense<0.000000e+00> : vector<32x128xf32>
    %15 = tpu.matmul %9, %5, %cst_11 {dimension_numbers = #tpu.dot_dimension_numbers<[1], [0], [0], [1], [0, 0, 1, 1], [], []>} : vector<32x16xf32>, vector<16x128xf32>, vector<32x128xf32> -> vector<32x128xf32>
    %16 = arith.addf %14, %15 : vector<32x128xf32>
    %c0_12 = arith.constant 0 : index
    %c0_13 = arith.constant 0 : index
    %17 = vector.load %arg6[%c0_12, %c0_13] : memref<128x128xbf16, #tpu.memory_space<vmem>>, vector<128x128xbf16>
    %18 = arith.extf %17 : vector<128x128xbf16> to vector<128x128xf32>
    %cst_14 = arith.constant dense<0.000000e+00> : vector<32x128xf32>
    %19 = tpu.matmul %16, %18, %cst_14 {dimension_numbers = #tpu.dot_dimension_numbers<[1], [0], [0], [1], [0, 0, 1, 1], [], []>} : vector<32x128xf32>, vector<128x128xf32>, vector<32x128xf32> -> vector<32x128xf32>
    %c0_15 = arith.constant 0 : index
    %c0_16 = arith.constant 0 : index
    %20 = vector.load %arg7[%c0_15, %c0_16] : memref<32x64xbf16, #tpu.memory_space<vmem>>, vector<32x64xbf16>
    %c0_17 = arith.constant 0 : index
    %c0_18 = arith.constant 0 : index
    %21 = vector.load %arg8[%c0_17, %c0_18] : memref<64x384xbf16, #tpu.memory_space<vmem>>, vector<64x384xbf16>
    %cst_19 = arith.constant dense<0.000000e+00> : vector<32x384xf32>
    %22 = tpu.matmul %20, %21, %cst_19 {dimension_numbers = #tpu.dot_dimension_numbers<[1], [0], [0], [1], [0, 0, 1, 1], [], []>} : vector<32x64xbf16>, vector<64x384xbf16>, vector<32x384xf32> -> vector<32x384xf32>
    %23 = vector.extract_strided_slice %22 {offsets = [0, 0], sizes = [32, 128], strides = [1, 1]} : vector<32x384xf32> to vector<32x128xf32>
    %24 = vector.extract_strided_slice %22 {offsets = [0, 128], sizes = [32, 128], strides = [1, 1]} : vector<32x384xf32> to vector<32x128xf32>
    %25 = vector.extract_strided_slice %22 {offsets = [0, 256], sizes = [32, 128], strides = [1, 1]} : vector<32x384xf32> to vector<32x128xf32>
    %26 = arith.addf %19, %24 : vector<32x128xf32>
    %c0_20 = arith.constant 0 : index
    %c0_21 = arith.constant 0 : index
    %27 = vector.load %arg9[%c0_20, %c0_21] : memref<32x32xbf16, #tpu.memory_space<vmem>>, vector<32x32xbf16>
    %28 = arith.extf %27 : vector<32x32xbf16> to vector<32x32xf32>
    %c0_22 = arith.constant 0 : index
    %c0_23 = arith.constant 0 : index
    %29 = vector.load %arg10[%c0_22, %c0_23] : memref<32x32xbf16, #tpu.memory_space<vmem>>, vector<32x32xbf16>
    %30 = arith.extf %29 : vector<32x32xbf16> to vector<32x32xf32>
    %cst_24 = arith.constant dense<0.000000e+00> : vector<32x128xf32>
    %31 = tpu.matmul %28, %23, %cst_24 {dimension_numbers = #tpu.dot_dimension_numbers<[1], [0], [0], [1], [0, 0, 1, 1], [], []>} : vector<32x32xf32>, vector<32x128xf32>, vector<32x128xf32> -> vector<32x128xf32>
    %32 = arith.addf %26, %31 : vector<32x128xf32>
    %cst_25 = arith.constant dense<0.000000e+00> : vector<32x128xf32>
    %33 = tpu.matmul %30, %25, %cst_25 {dimension_numbers = #tpu.dot_dimension_numbers<[1], [0], [0], [1], [0, 0, 1, 1], [], []>} : vector<32x32xf32>, vector<32x128xf32>, vector<32x128xf32> -> vector<32x128xf32>
    %34 = arith.addf %32, %33 : vector<32x128xf32>
    %c0_26 = arith.constant 0 : index
    %c0_27 = arith.constant 0 : index
    %35 = vector.load %arg11[%c0_26, %c0_27] : memref<32x128xf32, #tpu.memory_space<vmem>>, vector<32x128xf32>
    tpu.vector_store %arg11[%c0_26, %c0_27], %34 {strides = array<i32>} : memref<32x128xf32, #tpu.memory_space<vmem>>, vector<32x128xf32>,
    return
  }
  func.func @transform_0(%arg0: i32) -> (i32, i32) {
    %c0_i32 = arith.constant 0 : i32
    %c0_i32_0 = arith.constant 0 : i32
    %c0_i32_1 = arith.constant 0 : i32
    return %c0_i32, %c0_i32_0 : i32, i32
  }
  func.func @transform_1(%arg0: i32) -> (i32, i32) {
    %c0_i32 = arith.constant 0 : i32
    %c0_i32_0 = arith.constant 0 : i32
    %c0_i32_1 = arith.constant 0 : i32
    return %c0_i32, %c0_i32_0 : i32, i32
  }
  func.func @transform_2(%arg0: i32) -> (i32, i32) {
    %c0_i32 = arith.constant 0 : i32
    %c0_i32_0 = arith.constant 0 : i32
    %c0_i32_1 = arith.constant 0 : i32
    return %c0_i32, %c0_i32_0 : i32, i32
  }
  func.func @transform_3(%arg0: i32) -> (i32, i32) {
    %c0_i32 = arith.constant 0 : i32
    %c0_i32_0 = arith.constant 0 : i32
    %c0_i32_1 = arith.constant 0 : i32
    return %c0_i32, %c0_i32_0 : i32, i32
  }
  func.func @transform_4(%arg0: i32) -> (i32, i32) {
    %c0_i32 = arith.constant 0 : i32
    %c0_i32_0 = arith.constant 0 : i32
    %c0_i32_1 = arith.constant 0 : i32
    return %c0_i32, %c0_i32_0 : i32, i32
  }
  func.func @transform_5(%arg0: i32) -> (i32, i32) {
    %c0_i32 = arith.constant 0 : i32
    %c0_i32_0 = arith.constant 0 : i32
    %c0_i32_1 = arith.constant 0 : i32
    return %c0_i32, %c0_i32_0 : i32, i32
  }
  func.func @transform_6(%arg0: i32) -> (i32, i32) {
    %c0_i32 = arith.constant 0 : i32
    %c0_i32_0 = arith.constant 0 : i32
    %c0_i32_1 = arith.constant 0 : i32
    return %c0_i32, %c0_i32_0 : i32, i32
  }
  func.func @transform_7(%arg0: i32) -> (i32, i32) {
    %c0_i32 = arith.constant 0 : i32
    %c0_i32_0 = arith.constant 0 : i32
    %c0_i32_1 = arith.constant 0 : i32
    return %c0_i32, %c0_i32_0 : i32, i32
  }
  func.func @transform_8(%arg0: i32) -> (i32, i32) {
    %c0_i32 = arith.constant 0 : i32
    %c0_i32_0 = arith.constant 0 : i32
    %c0_i32_1 = arith.constant 0 : i32
    return %c0_i32, %c0_i32_0 : i32, i32
  }
  func.func @transform_9(%arg0: i32) -> (i32, i32) {
    %c0_i32 = arith.constant 0 : i32
    %c0_i32_0 = arith.constant 0 : i32
    %c0_i32_1 = arith.constant 0 : i32
    return %c0_i32, %c0_i32_0 : i32, i32
  }
  func.func @transform_10(%arg0: i32) -> (i32, i32) {
    %c0_i32 = arith.constant 0 : i32
    %c0_i32_0 = arith.constant 0 : i32
    %c0_i32_1 = arith.constant 0 : i32
    return %c0_i32, %c0_i32_0 : i32, i32
  }
}

</mosaic_0001>

<bundles_post_ra>
// kernel: tpu_custom_call.1
= control target key start
LH: loop header
LB: loop body
LE: loop exit
PB: predicated region body
PF: predicated region fallthrough
CT: control target
= control target key end

     0   :  { %15 = vsyncpa [#allocation3], 0  ;;  %s1781_s0 = inlined_call_operand.hbm [shape: bf16[16,32], index: 0, kind: input, shape index: {}]   ;;  %s1782_s1 = inlined_call_operand.hbm [shape: bf16[32,384], index: 1, kind: input, shape index: {}]   ;;  %s1783_s2 = inlined_call_operand.vmem [shape: bf16[32,16], index: 2, kind: input, shape index: {}]   ;;  %s1784_s3 = inlined_call_operand.vmem [shape: bf16[32,16], index: 3, kind: input, shape index: {}]   ;;  %s1785_s4 = inlined_call_operand.vmem [shape: bf16[32,16], index: 4, kind: input, shape index: {}]   ;;  %s1786_s5 = inlined_call_operand.vmem [shape: bf16[128,128], index: 5, kind: input, shape index: {}]   ;;  %s1787_s6 = inlined_call_operand.vmem [shape: bf16[32,64], index: 6, kind: input, shape index: {}]   ;;  %s1788_s7 = inlined_call_operand.hbm [shape: bf16[64,384], index: 7, kind: input, shape index: {}]   ;;  %s1789_s8 = inlined_call_operand.hbm [shape: bf16[32,32], index: 8, kind: input, shape index: {}]   ;;  %s1790_s9 = inlined_call_operand.hbm [shape: bf16[32,32], index: 9, kind: input, shape index: {}]   ;;  %s1791_s10 = inlined_call_operand.hbm [shape: f32[32,128], index: 10, kind: output, shape index: {}]  }
   0x1   :  { %16 = vsyncpa [#allocation6], 0 }
   0x2   :  { %17 = vsyncpa [#allocation9], 0 }
   0x3   :  { %18 = vsyncpa [#allocation4], 0  ;;  %s1601_s13 = smov [#allocation5]  }
   0x4   :  { %s36_s14 = sshll.u32 %s1601_s13, 4  ;;  %s37_s14 = int_to_ptr.vmem [resolvable:$true] %s36_s14 }
   0x5   :  { %s1481_s15 = scalar_lea.vmem %s37_s14, 768  ;;  %p1486_p1 = scmp.lt.s32.totalorder %s37_s14, %s37_s14 }
   0x6   :  { %p1482_p0 = scmp.ne.s32.totalorder %s37_s14, %s1481_s15  ;;  %p1487_p2 = scmp.lt.s32.totalorder %s1481_s15, %s1481_s15 }
   0x8   :  { %p1488_p3 = por %p1487_p2, %p1486_p1 }
   0xa   :  { %p1489_p4 = pnand %p1488_p3, %p1482_p0 }
   0xc   :  { %1492 = shalt.err (!%p1489_p4)
}
   0xd   :  { %s1602_s16 = smov 192   ;;  %s1603_s17 = smov 12  }
   0xe   :  { %42 = dma.hbm_to_vmem [thread:$0]  %s1782_s1, 768, %s37_s14, [#allocation6], %s1602_s16, %s1602_s16, %s1603_s17  }
   0xf   :  { %s1604_s20 = smov [#allocation8]   ;;  %s1605_s22 = smov [#allocation2]  }
  0x10   :  { %s70_s21 = sshll.u32 %s1604_s20, 4  ;;  %s24_s23 = sshll.u32 %s1605_s22, 4  ;;  %s71_s21 = int_to_ptr.vmem [resolvable:$true] %s70_s21  ;;  %s25_s23 = int_to_ptr.vmem [resolvable:$true] %s24_s23 }
  0x11   :  { %s1501_s24 = scalar_lea.vmem %s71_s21, 256  ;;  %p1506_p6 = scmp.lt.s32.totalorder %s71_s21, %s71_s21 }
  0x12   :  { %p1502_p5 = scmp.ne.s32.totalorder %s71_s21, %s1501_s24  ;;  %p1507_p7 = scmp.lt.s32.totalorder %s1501_s24, %s1501_s24 }
  0x14   :  { %p1508_p8 = por %p1507_p7, %p1506_p6 }
  0x16   :  { %p1509_p9 = pnand %p1508_p8, %p1502_p5 }
  0x18   :  { %1512 = shalt.err (!%p1509_p9)
}
  0x19   :  { %s1606_s25 = smov 64   ;;  %s1607_s26 = smov 4  }
  0x1a   :  { %76 = dma.hbm_to_vmem [thread:$0]  %s1789_s8, 256, %s71_s21, [#allocation9], %s1606_s25, %s1606_s25, %s1607_s26  }
  0x1b   :  { %s1521_s1 = scalar_lea.vmem %s25_s23, 128  ;;  %p1526_p11 = scmp.lt.s32.totalorder %s25_s23, %s25_s23 }
  0x1c   :  { %p1522_p10 = scmp.ne.s32.totalorder %s25_s23, %s1521_s1  ;;  %p1527_p12 = scmp.lt.s32.totalorder %s1521_s1, %s1521_s1 }
  0x1e   :  { %p1528_p13 = por %p1527_p12, %p1526_p11 }
  0x20   :  { %p1529_p0 = pnand %p1528_p13, %p1522_p10 }
  0x22   :  { %1532 = shalt.err (!%p1529_p0)
}
  0x23   :  { %30 = dma.hbm_to_vmem [thread:$0]  %s1781_s0, 128, %s25_s23, [#allocation3], %s1606_s25, %s1606_s25, %s1607_s26  }
  0x24   :  { %s1608_s11 = smov [#allocation7]   ;;  %s1609_s13 = smov [#allocation10]  }
  0x25   :  { %s58_s12 = sshll.u32 %s1608_s11, 4  ;;  %s82_s8 = sshll.u32 %s1609_s13, 4  ;;  %s59_s12 = int_to_ptr.vmem [resolvable:$true] %s58_s12  ;;  %s83_s8 = int_to_ptr.vmem [resolvable:$true] %s82_s8 }
  0x26   :  { %s1541_s14 = scalar_lea.vmem %s59_s12, 1536  ;;  %p1546_p2 = scmp.lt.s32.totalorder %s59_s12, %s59_s12 }
  0x27   :  { %p1542_p1 = scmp.ne.s32.totalorder %s59_s12, %s1541_s14  ;;  %p1547_p3 = scmp.lt.s32.totalorder %s1541_s14, %s1541_s14 }
  0x29   :  { %p1548_p4 = por %p1547_p3, %p1546_p2 }
  0x2b   :  { %p1549_p5 = pnand %p1548_p4, %p1542_p1 }
  0x2d   :  { %1552 = shalt.err (!%p1549_p5)
}
  0x2e   :  { %64 = dma.hbm_to_vmem [thread:$0]  %s1788_s7, 1536, %s59_s12, [#allocation6], %s1602_s16, %s1602_s16, %s1603_s17  }
  0x2f   :  { %s1561_s0 = scalar_lea.vmem %s83_s8, 256  ;;  %p1566_p7 = scmp.lt.s32.totalorder %s83_s8, %s83_s8 }
  0x30   :  { %p1562_p6 = scmp.ne.s32.totalorder %s83_s8, %s1561_s0  ;;  %p1567_p8 = scmp.lt.s32.totalorder %s1561_s0, %s1561_s0 }
  0x32   :  { %p1568_p9 = por %p1567_p8, %p1566_p7 }
  0x34   :  { %p1569_p10 = pnand %p1568_p9, %p1562_p6 }
  0x36   :  { %1572 = shalt.err (!%p1569_p10)
}
  0x37   :  { %88 = dma.hbm_to_vmem [thread:$0]  %s1790_s9, 256, %s83_s8, [#allocation9], %s1606_s25, %s1606_s25, %s1607_s26  }
  0x38   :  { %1593 = dma.done.wait [#allocation3], 128  }
  0x39   :  { %1594 = vsyncadd [#allocation3], 4294967168 }
  0x3a   :  { %1595 = dma.done.wait [#allocation6], 2304  }
  0x3b   :  { %1596 = vsyncadd [#allocation6], 4294964992 }
  0x3c   :  { %1597 = dma.done.wait [#allocation9], 512  }
  0x3d   :  { %1598 = vsyncadd [#allocation9], 4294966784  ;;  %v1610_v0 = vmov 0   ;;  %v1611_v1 = vmov 0.0   ;;  %vm1612_vm0 = vmmov 0   ;;  %v1452_v6 = vld [vmem:[#allocation2] sm:$0xff]  }
  0x3e   :  { %188 = vmatprep.mubr.bf16.mxu0 %v1610_v0  ;;  %1315 = vmatprep.subr.bf16.mxu1 %v1611_v1  ;;  %v1446_v2 = vld [vmem:[#allocation5 + $0x1c] ss:$12 sps:$4 sm:$0xff]   ;;  %v1448_v3 = vld [vmem:[#allocation5 + $0x18] ss:$12 sps:$4 sm:$0xff]   ;;  %v1451_v5 = vld [vmem:[#allocation5] ss:$12 sps:$4 sm:$0xff]  }
  0x3f   :  { %1319 = vmatprep.mubr.msk.bf16.mxu1 %vm1612_vm0, %v1611_v1  ;;  %168 = vmatprep.subr.bf16.mxu0 %v1446_v2  ;;  %v1449_v4 = vld [vmem:[#allocation5 + $0x4] ss:$12 sps:$4 sm:$0xff]   ;;  %v1453_v7 = vld [vmem:[#allocation5 + $0x20] ss:$12 sps:$4 sm:$0xff]   ;;  %v1454_v8 = vld [vmem:[#allocation5 + $0x8] ss:$12 sps:$4 sm:$0xff]  }
  0x40   :  { %169 = vmatpush1.bf16.msra.mxu0 %v1448_v3  ;;  %1316 = vmatpush3.bf16.msra.mxu1 %v1453_v7  ;;  %vm152_vm1 = vcmask 261120   ;;  %v1169_v9 = vld [vmem:[%s1783_s2] sm:$0xff]   ;;  %vm264_vm2 = vcmask 130048   ;;  %v1242_v19 = vld [vmem:[%s1785_s4 + $0x8] sm:$0xff]   ;;  %v1461_v38 = vld [vmem:[#allocation7 + $0x18] ss:$12 sps:$4 sm:$0xff]  }
  0x41   :  { %170 = vmatprep.subr.bf16.mxu0 %v1449_v4  ;;  %1317 = vmatprep.subr.bf16.mxu1 %v1611_v1  ;;  %v1170_v10 = vunpack.c.l.bf16 %v1169_v9  ;;  %v1185_v11 = vld [vmem:[%s1785_s4] sm:$0xff]   ;;  %v1171_v21 = vunpack.c.h.bf16 %v1169_v9  ;;  %v1240_v22 = vld [vmem:[%s1783_s2 + $0x8] sm:$0xff]   ;;  %v1190_v27 = vunpack.c.l.bf16 %v1242_v19  ;;  %v1191_v33 = vunpack.c.h.bf16 %v1242_v19  ;;  %v1249_v42 = vld [vmem:[%s1786_s5 + $0x38] sm:$0xff]  }
  0x42   :  { %v1186_v12 = vunpack.c.l.bf16 %v1185_v11  ;;  %v1457_v17 = vld [vmem:[#allocation7 + $0x4c] ss:$12 sps:$4 sm:$0xff]   ;;  %v1455_v23 = vld [vmem:[#allocation7 + $0x48] ss:$12 sps:$4 sm:$0xff]   ;;  %v1187_v24 = vunpack.c.h.bf16 %v1185_v11  ;;  %v1174_v29 = vunpack.c.l.bf16 %v1240_v22  ;;  %v1175_v31 = vunpack.c.h.bf16 %v1240_v22  ;;  %v1458_v32 = vld [vmem:[#allocation7 + $0x30] ss:$12 sps:$4 sm:$0xff]  }
  0x43   :  { %v1460_v26 = vld [vmem:[#allocation7 + $0x34] ss:$12 sps:$4 sm:$0xff]   ;;  %v1177_v30 = vld [vmem:[%s1784_s3] sm:$0xff]   ;;  %v1467_v37 = vld [vmem:[#allocation7 + $0x50] ss:$12 sps:$4 sm:$0xff]   ;;  %v1223_v46 = vunpack.c.h.bf16 %v1249_v42  ;;  %vm686_vm3 = vcmask 523264   ;;  %v1222_v50 = vunpack.c.l.bf16 %v1249_v42 }
  0x44   :  { %171 = vmatpush1.bf16.msra.mxu0 %v1451_v5  ;;  %1318 = vmatpush3.bf16.msra.mxu1 %v1454_v8  ;;  %v1463_v34 = vld [vmem:[#allocation7 + $0x1c] ss:$12 sps:$4 sm:$0xff]   ;;  %v1178_v35 = vunpack.c.l.bf16 %v1177_v30  ;;  %v1241_v36 = vld [vmem:[%s1784_s3 + $0x8] sm:$0xff]   ;;  %v1179_v39 = vunpack.c.h.bf16 %v1177_v30  ;;  %v1469_v43 = vld [vmem:[#allocation7 + $0x38] ss:$12 sps:$4 sm:$0xff]  }
  0x45   :  { %v1466_v40 = vld [vmem:[#allocation7 + $0x4] ss:$12 sps:$4 sm:$0xff]   ;;  %v1182_v41 = vunpack.c.l.bf16 %v1241_v36  ;;  %v1464_v44 = vld [vmem:[#allocation7] ss:$12 sps:$4 sm:$0xff]   ;;  %v1183_v45 = vunpack.c.h.bf16 %v1241_v36  ;;  %v1248_v49 = vld [vmem:[%s1786_s5 + $0x30] sm:$0xff]  }
  0x46   :  { %v1468_v47 = vld [vmem:[%s1787_s6] sm:$0xff]   ;;  %v1219_v52 = vunpack.c.h.bf16 %v1248_v49  ;;  %v1247_v53 = vld [vmem:[%s1786_s5 + $0x28] sm:$0xff]   ;;  %v1218_v54 = vunpack.c.l.bf16 %v1248_v49  ;;  %v1245_v60 = vld [vmem:[%s1786_s5 + $0x18] sm:$0xff]  }
  0x47   :  { %1128 = vmatmul.mubr.msk.bf16.vlgmr.msra.gmra.mxu0 %vm152_vm1, %v1452_v6  ;;  %1320 = vmatmul.mubr.msk.bf16.vlgmr.msra.gmra.mxu1 %vm152_vm1, %v1452_v6  ;;  %v1470_v48 = vld [vmem:[#allocation7 + $0x20] ss:$12 sps:$4 sm:$0xff]   ;;  %v1472_v51 = vld [vmem:[#allocation7 + $0x8] ss:$12 sps:$4 sm:$0xff]   ;;  %v1215_v56 = vunpack.c.h.bf16 %v1247_v53  ;;  %v1214_v58 = vunpack.c.l.bf16 %v1247_v53  ;;  %v1207_v62 = vunpack.c.h.bf16 %v1245_v60  ;;  %v1206_v63 = vunpack.c.l.bf16 %v1245_v60 }
  0x48   :  { %1337 = vmatprep.mubr.msk.f32.mxu1 %vm264_vm2, %v1170_v10  ;;  %1327 = vmatprep.mubr.msk.f32.mxu0 %vm264_vm2, %v1186_v12  ;;  %v1471_v55 = vld [vmem:[%s1787_s6 + $0x8] sm:$0xff]   ;;  %v1246_v57 = vld [vmem:[%s1786_s5 + $0x20] sm:$0xff]   ;;  %v1225_v9 = vld [vmem:[#allocation8] sm:$0xff]  }
  0x49   :  { %v1211_v59 = vunpack.c.h.bf16 %v1246_v57  ;;  %v1210_v61 = vunpack.c.l.bf16 %v1246_v57  ;;  %v1243_v3 = vld [vmem:[%s1786_s5 + $0x8] sm:$0xff]   ;;  %v1193_v6 = vld [vmem:[%s1786_s5] sm:$0xff]   ;;  %v1226_v10 = vunpack.c.l.bf16 %v1225_v9 }
  0x4a   :  { %v1199_v4 = vunpack.c.h.bf16 %v1243_v3  ;;  %v1198_v5 = vunpack.c.l.bf16 %v1243_v3  ;;  %v1195_v7 = vunpack.c.h.bf16 %v1193_v6  ;;  %v1194_v8 = vunpack.c.l.bf16 %v1193_v6 }
 0x107   :  { %v190_v13 = vpop.f32.mrf.mxu0  ;;  %v233_v15 = vpop.f32.mrf.mxu1 }
 0x109   :  { %v192_v14 = vpop.f32.mrf.mxu0  ;;  %v1321_v18 = vpop.f32.mrf.mxu1 }
 0x10b   :  { %v194_v16 = vpop.f32.mrf.mxu0  ;;  %v236_v25 = vpop.f32.mrf.mxu1 }
 0x10c   :  { %1333 = vmatprep.subr.mxu1 %v194_v16 }
 0x10d   :  { %v196_v20 = vpop.f32.mrf.mxu0  ;;  %1334 = vmatpush3.msra.mxu1 %v194_v16  ;;  %v1322_v28 = vpop.f32.mrf.mxu1 }
 0x10e   :  { %1323 = vmatprep.subr.mxu0 %v196_v20  ;;  %1335 = vmatprep.subr.mxu1 %v190_v13 }
 0x10f   :  { %1324 = vmatpush3.msra.mxu0 %v196_v20  ;;  %1336 = vmatpush3.msra.mxu1 %v190_v13 }
 0x110   :  { %1325 = vmatprep.subr.mxu0 %v192_v14  ;;  %701 = vmatprep.subr.bf16.mxu1 %v1457_v17 }
 0x111   :  { %1326 = vmatpush3.msra.mxu0 %v192_v14  ;;  %1338 = vmatmul.mubr.msk.f32.vlgmr.msra.gmra.mxu1 %vm264_vm2, %v1171_v21 }
 0x112   :  { %702 = vmatpush1.bf16.msra.mxu1 %v1455_v23  ;;  %1328 = vmatmul.mubr.msk.f32.vlgmr.msra.gmra.mxu0 %vm264_vm2, %v1187_v24 }
 0x113   :  { %703 = vmatprep.subr.bf16.mxu1 %v1460_v26  ;;  %1330 = vmatprep.mubr.msk.f32.mxu0 %vm264_vm2, %v1190_v27 }
 0x114   :  { %1343 = vmatprep.subr.mxu0 %v236_v25  ;;  %1340 = vmatprep.mubr.msk.f32.mxu1 %vm264_vm2, %v1174_v29 }
 0x115   :  { %1344 = vmatpush3.msra.mxu0 %v236_v25  ;;  %1341 = vmatmul.mubr.msk.f32.gmra.mxu1 %vm264_vm2, %v1175_v31 }
 0x116   :  { %704 = vmatpush1.bf16.msra.mxu1 %v1458_v32  ;;  %1331 = vmatmul.mubr.msk.f32.gmra.mxu0 %vm264_vm2, %v1191_v33 }
 0x117   :  { %1345 = vmatprep.subr.mxu0 %v233_v15  ;;  %705 = vmatprep.subr.bf16.mxu1 %v1463_v34 }
 0x118   :  { %1346 = vmatpush3.msra.mxu0 %v233_v15  ;;  %1347 = vmatprep.mubr.msk.f32.mxu0 %vm264_vm2, %v1178_v35 }
 0x119   :  { %1353 = vmatprep.subr.bf16.mxu0 %v1467_v37  ;;  %725 = vmatprep.mubr.bf16.mxu1 %v1610_v0 }
 0x11a   :  { %706 = vmatpush1.bf16.msra.mxu1 %v1461_v38  ;;  %1348 = vmatmul.mubr.msk.f32.vlgmr.msra.gmra.mxu0 %vm264_vm2, %v1179_v39  ;;  %v1250_v39 = vld [vmem:[#allocation8 + $0x8] sm:$0xff]  }
 0x11b   :  { %707 = vmatprep.subr.bf16.mxu1 %v1466_v40  ;;  %1350 = vmatprep.mubr.msk.f32.mxu0 %vm264_vm2, %v1182_v41  ;;  %v1227_v41 = vunpack.c.h.bf16 %v1225_v9  ;;  %v1230_v42 = vunpack.c.l.bf16 %v1250_v39 }
 0x11c   :  { %1354 = vmatpush3.bf16.msra.mxu0 %v1467_v37 }
 0x11d   :  { %1355 = vmatprep.subr.bf16.mxu0 %v1469_v43 }
 0x11e   :  { %708 = vmatpush1.bf16.msra.mxu1 %v1464_v44  ;;  %1351 = vmatmul.mubr.msk.f32.gmra.mxu0 %vm264_vm2, %v1183_v45  ;;  %v1231_v45 = vunpack.c.h.bf16 %v1250_v39 }
 0x11f   :  { %1361 = vmatprep.mubr.msk.bf16.mxu0 %vm686_vm3, %v1468_v47  ;;  %1365 = vmatprep.subr.mxu1 %v1223_v46 }
 0x120   :  { %1356 = vmatpush3.bf16.msra.mxu0 %v1469_v43  ;;  %v1233_v43 = vld [vmem:[#allocation10] sm:$0xff]  }
 0x121   :  { %1156 = vmatmul.mubr.msk.bf16.vlgmr.msra.gmra.mxu1 %vm686_vm3, %v1468_v47  ;;  %1357 = vmatprep.subr.bf16.mxu0 %v1470_v48  ;;  %v1251_v47 = vld [vmem:[#allocation10 + $0x8] sm:$0xff]   ;;  %v1235_v49 = vunpack.c.h.bf16 %v1233_v43 }
 0x122   :  { %735 = vmatprep.mubr.bf16.mxu1 %v1610_v0  ;;  %1366 = vmatpush3.msra.mxu1 %v1223_v46  ;;  %v1244_v0 = vld [vmem:[%s1786_s5 + $0x10] sm:$0xff]   ;;  %v1234_v46 = vunpack.c.l.bf16 %v1233_v43  ;;  %s1613_s5 = smov [#allocation11]  }
 0x123   :  { %1367 = vmatprep.subr.mxu1 %v1222_v50  ;;  %v1203_v1 = vunpack.c.h.bf16 %v1244_v0  ;;  %v1202_v2 = vunpack.c.l.bf16 %v1244_v0  ;;  %s1107_s17 = sshll.u32 %s1613_s5, 4  ;;  %s1108_s17 = int_to_ptr.vmem [resolvable:$true] %s1107_s17 }
 0x124   :  { %1358 = vmatpush3.bf16.msra.mxu0 %v1470_v48  ;;  %1368 = vmatpush3.msra.mxu1 %v1222_v50  ;;  %v1238_v50 = vunpack.c.l.bf16 %v1251_v47  ;;  %s1573_s21 = scalar_lea.vmem %s1108_s17, 512  ;;  %p1578_p12 = scmp.lt.s32.totalorder %s1108_s17, %s1108_s17 }
 0x125   :  { %1359 = vmatprep.subr.bf16.mxu0 %v1472_v51  ;;  %1369 = vmatprep.subr.mxu1 %v1219_v52  ;;  %p1574_p11 = scmp.ne.s32.totalorder %s1108_s17, %s1573_s21  ;;  %p1579_p13 = scmp.lt.s32.totalorder %s1573_s21, %s1573_s21 }
 0x126   :  { %1370 = vmatpush3.msra.mxu1 %v1219_v52 }
 0x127   :  { %1371 = vmatprep.subr.mxu1 %v1218_v54  ;;  %p1580_p0 = por %p1579_p13, %p1578_p12 }
 0x128   :  { %1360 = vmatpush3.bf16.msra.mxu0 %v1472_v51  ;;  %1372 = vmatpush3.msra.mxu1 %v1218_v54  ;;  %v1239_v51 = vunpack.c.h.bf16 %v1251_v47 }
 0x129   :  { %1157 = vmatmul.mubr.msk.bf16.gmra.mxu1 %vm686_vm3, %v1471_v55  ;;  %1373 = vmatprep.subr.mxu1 %v1215_v56  ;;  %p1581_p1 = pnand %p1580_p0, %p1574_p11 }
 0x12a   :  { %1374 = vmatpush3.msra.mxu1 %v1215_v56 }
 0x12b   :  { %1362 = vmatmul.mubr.msk.bf16.vlgmr.msra.gmra.mxu0 %vm686_vm3, %v1471_v55  ;;  %1375 = vmatprep.subr.mxu1 %v1214_v58 }
 0x12c   :  { %1376 = vmatpush3.msra.mxu1 %v1214_v58  ;;  %1411 = vmatprep.mubr.msk.f32.mxu0 %vm152_vm1, %v1226_v10 }
 0x12d   :  { %1377 = vmatprep.subr.mxu1 %v1211_v59 }
 0x12e   :  { %1378 = vmatpush3.msra.mxu1 %v1211_v59 }
 0x12f   :  { %1379 = vmatprep.subr.mxu1 %v1210_v61 }
 0x130   :  { %1380 = vmatpush3.msra.mxu1 %v1210_v61 }
 0x131   :  { %1381 = vmatprep.subr.mxu1 %v1207_v62 }
 0x132   :  { %1382 = vmatpush3.msra.mxu1 %v1207_v62 }
 0x133   :  { %1383 = vmatprep.subr.mxu1 %v1206_v63 }
 0x134   :  { %1384 = vmatpush3.msra.mxu1 %v1206_v63 }
 0x135   :  { %1385 = vmatprep.subr.mxu1 %v1203_v1 }
 0x136   :  { %1386 = vmatpush3.msra.mxu1 %v1203_v1 }
 0x137   :  { %1387 = vmatprep.subr.mxu1 %v1202_v2 }
 0x138   :  { %1388 = vmatpush3.msra.mxu1 %v1202_v2 }
 0x139   :  { %1389 = vmatprep.subr.mxu1 %v1199_v4 }
 0x13a   :  { %1390 = vmatpush3.msra.mxu1 %v1199_v4 }
 0x13b   :  { %1391 = vmatprep.subr.mxu1 %v1198_v5 }
 0x13c   :  { %1392 = vmatpush3.msra.mxu1 %v1198_v5 }
 0x13d   :  { %1393 = vmatprep.subr.mxu1 %v1195_v7 }
 0x13e   :  { %1394 = vmatpush3.msra.mxu1 %v1195_v7 }
 0x13f   :  { %1395 = vmatprep.subr.mxu1 %v1194_v8 }
 0x140   :  { %1396 = vmatpush3.msra.mxu1 %v1194_v8 }
 0x1d1   :  { %v1339_v12 = vpop.f32.mrf.mxu1 }
 0x1d2   :  { %v1329_v11 = vpop.f32.mrf.mxu0 }
 0x1d3   :  { %v440_v14 = vpop.f32.mrf.mxu1  ;;  %v446_v20 = vadd.f32 %v1339_v12, %v1329_v11 }
 0x1d4   :  { %v343_v13 = vpop.f32.mrf.mxu0 }
 0x1d5   :  { %v1342_v17 = vpop.f32.mrf.mxu1  ;;  %v441_v19 = vadd.f32 %v440_v14, %v343_v13 }
 0x1d6   :  { %v1332_v15 = vpop.f32.mrf.mxu0 }
 0x1d7   :  { %v450_v22 = vpop.f32.mrf.mxu1  ;;  %v456_v25 = vadd.f32 %v1342_v17, %v1332_v15 }
 0x1d8   :  { %v353_v16 = vpop.f32.mrf.mxu0 }
 0x1d9   :  { %v451_v27 = vadd.f32 %v450_v22, %v353_v16 }
 0x1da   :  { %v1349_v18 = vpop.f32.mrf.mxu0 }
 0x1db   :  { %v557_v24 = vadd.f32 %v1349_v18, %v446_v20 }
 0x1dc   :  { %v537_v21 = vpop.f32.mrf.mxu0 }
 0x1dd   :  { %v556_v23 = vadd.f32 %v537_v21, %v441_v19 }
 0x1de   :  { %v1352_v26 = vpop.f32.mrf.mxu0 }
 0x1df   :  { %1397 = vmatprep.mubr.f32.mxu1 %v556_v23  ;;  %v559_v31 = vadd.f32 %v1352_v26, %v456_v25 }
 0x1e0   :  { %v547_v28 = vpop.f32.mrf.mxu0  ;;  %1398 = vmatmul.mubr.f32.vlgmr.msra.gmra.mxu1 %v557_v24 }
 0x1e1   :  { %v558_v29 = vadd.f32 %v547_v28, %v451_v27  ;;  %v727_v30 = vpop.f32.mrf.mxu1 }
 0x1e3   :  { %v729_v32 = vpop.f32.mrf.mxu1  ;;  %1400 = vmatprep.mubr.f32.mxu1 %v558_v29 }
 0x1e4   :  { %1401 = vmatmul.mubr.f32.gmra.mxu1 %v559_v31 }
 0x1e5   :  { %v731_v33 = vpop.f32.mrf.mxu1 }
 0x1e7   :  { %v733_v34 = vpop.f32.mrf.mxu1 }
 0x1e9   :  { %v737_v35 = vpop.f32.mrf.mxu1 }
 0x1eb   :  { %v739_v36 = vpop.f32.mrf.mxu1  ;;  %v1363_v38 = vpop.f32.mrf.mxu0 }
 0x1ed   :  { %v741_v37 = vpop.f32.mrf.mxu1  ;;  %v780_v40 = vpop.f32.mrf.mxu0 }
 0x1ee   :  { %1403 = vmatprep.subr.mxu0 %v741_v37 }
 0x1ef   :  { %1404 = vmatpush3.msra.mxu0 %v741_v37  ;;  %v1364_v44 = vpop.f32.mrf.mxu0  ;;  %v743_v52 = vpop.f32.mrf.mxu1 }
 0x1f0   :  { %1405 = vmatprep.subr.mxu0 %v737_v35 }
 0x1f1   :  { %1406 = vmatpush3.msra.mxu0 %v737_v35  ;;  %v783_v48 = vpop.f32.mrf.mxu0 }
 0x1f2   :  { %1407 = vmatprep.subr.mxu0 %v731_v33 }
 0x1f3   :  { %1408 = vmatpush3.msra.mxu0 %v731_v33 }
 0x1f4   :  { %1409 = vmatprep.subr.mxu0 %v727_v30 }
 0x1f5   :  { %1410 = vmatpush3.msra.mxu0 %v727_v30 }
 0x1f6   :  { %1412 = vmatmul.mubr.msk.f32.vlgmr.msra.gmra.mxu0 %vm152_vm1, %v1227_v41  ;;  %1417 = vmatprep.subr.mxu0 %v1364_v44 }
 0x1f7   :  { %1418 = vmatpush3.msra.mxu0 %v1364_v44  ;;  %1414 = vmatprep.mubr.msk.f32.mxu0 %vm152_vm1, %v1230_v42 }
 0x1f8   :  { %1419 = vmatprep.subr.mxu0 %v1363_v38 }
 0x1f9   :  { %1420 = vmatpush3.msra.mxu0 %v1363_v38 }
 0x1fa   :  { %1415 = vmatmul.mubr.msk.f32.gmra.mxu0 %vm152_vm1, %v1231_v45  ;;  %1421 = vmatprep.subr.mxu0 %v783_v48 }
 0x1fb   :  { %1422 = vmatpush3.msra.mxu0 %v783_v48  ;;  %1425 = vmatprep.mubr.msk.f32.mxu0 %vm152_vm1, %v1234_v46 }
 0x1fc   :  { %1423 = vmatprep.subr.mxu0 %v780_v40 }
 0x1fd   :  { %1424 = vmatpush3.msra.mxu0 %v780_v40 }
 0x1fe   :  { %1426 = vmatmul.mubr.msk.f32.vlgmr.msra.gmra.mxu0 %vm152_vm1, %v1235_v49 }
 0x1ff   :  { %1428 = vmatprep.mubr.msk.f32.mxu0 %vm152_vm1, %v1238_v50 }
 0x202   :  { %1429 = vmatmul.mubr.msk.f32.gmra.mxu0 %vm152_vm1, %v1239_v51 }
 0x2a0   :  { %v1399_v53 = vpop.f32.mrf.mxu1 }
 0x2a1   :  { %v867_v59 = vadd.f32 %v1399_v53, %v733_v34 }
 0x2a2   :  { %v861_v54 = vpop.f32.mrf.mxu1 }
 0x2a3   :  { %v862_v61 = vadd.f32 %v861_v54, %v729_v32 }
 0x2a4   :  { %v1402_v57 = vpop.f32.mrf.mxu1 }
 0x2a5   :  { %v877_v1 = vadd.f32 %v1402_v57, %v743_v52 }
 0x2a6   :  { %v871_v63 = vpop.f32.mrf.mxu1 }
 0x2a7   :  { %v872_v5 = vadd.f32 %v871_v63, %v739_v36 }
 0x2b6   :  { %v1413_v55 = vpop.f32.mrf.mxu0 }
 0x2b7   :  { %v994_v62 = vadd.f32 %v1413_v55, %v867_v59 }
 0x2b8   :  { %v974_v56 = vpop.f32.mrf.mxu0 }
 0x2b9   :  { %v993_v2 = vadd.f32 %v974_v56, %v862_v61 }
 0x2ba   :  { %v1416_v58 = vpop.f32.mrf.mxu0 }
 0x2bb   :  { %v996_v6 = vadd.f32 %v1416_v58, %v877_v1 }
 0x2bc   :  { %v984_v60 = vpop.f32.mrf.mxu0 }
 0x2bd   :  { %v995_v9 = vadd.f32 %v984_v60, %v872_v5 }
 0x2be   :  { %v1427_v0 = vpop.f32.mrf.mxu0 }
 0x2bf   :  { %v1095_v3 = vadd.f32 %v1427_v0, %v994_v62 }
 0x2c0   :  { %v1075_v4 = vpop.f32.mrf.mxu0 }
 0x2c1   :  { %1099 = vst [vmem:[#allocation11 + $0x8] sm:$0xff] %v1095_v3  ;;  %v1094_v7 = vadd.f32 %v1075_v4, %v993_v2 }
 0x2c2   :  { %v1430_v8 = vpop.f32.mrf.mxu0 }
 0x2c3   :  { %1098 = vst [vmem:[#allocation11] sm:$0xff] %v1094_v7  ;;  %v1097_v10 = vadd.f32 %v1430_v8, %v996_v6 }
 0x2c4   :  { %v1085_v11 = vpop.f32.mrf.mxu0 }
 0x2c5   :  { %1101 = vst [vmem:[#allocation11 + $0x18] sm:$0xff] %v1097_v10  ;;  %v1096_v12 = vadd.f32 %v1085_v11, %v995_v9 }
 0x2c7   :  { %1100 = vst [vmem:[#allocation11 + $0x10] sm:$0xff] %v1096_v12 }
 0x2c8   :  { %1584 = shalt.err (!%p1581_p1)
}
 0x2c9   :  { %s1614_s22 = smov 128   ;;  %s1615_s23 = smov 8  }
 0x2ca   :  { %1113 = dma.vmem_to_hbm [thread:$0]  %s1108_s17, 512, %s1791_s10, [#allocation4], %s1614_s22, %s1614_s22, %s1615_s23  }
 0x2cb   :  { %1599 = dma.done.wait [#allocation4], 512  }
 0x2cc   :  { %1600 = vsyncadd [#allocation4], 4294966784 }
 0x2cd   :  { %1117 = vsyncpa [#allocation3], 1 }
 0x2ce   :  { %1118 = vsyncpa [#allocation6], 1 }
 0x2cf   :  { %1119 = vsyncpa [#allocation9], 1 }
 0x2d0   :  { %1120 = vsyncpa [#allocation4], 1 }

</bundles_post_ra>
